<compile_context>
chip_gen: v6e
topology: v6e:2x2x1
jax: 0.10.0
libtpu: 0.0.40
codegen_flags: <defaults>
</compile_context>

<pallas_src>
import functools
import math

import jax
import jax.numpy as jnp
from jax import lax
from jax.experimental import pallas as pl
from jax.experimental.pallas import tpu as pltpu

_LANE = 128


def _round_up(x: int, m: int) -> int:
    return ((x + m - 1) // m) * m


# --------------------------------------------------------------------------- #
# FIR design helpers (plain JAX glue, computed once in the wrapper)
# --------------------------------------------------------------------------- #
def _hann_window(N: int) -> jnp.ndarray:
    # Symmetric (zero-endpoint) Hann — the standard zero-phase FIR design window.
    # TODO(synk): confirm grafx's exact window convention (periodic vs symmetric).
    if N <= 1:
        return jnp.ones((max(N, 1),), jnp.float32)
    n = jnp.arange(N, dtype=jnp.float32)
    return (0.5 - 0.5 * jnp.cos(2.0 * math.pi * n / (N - 1))).astype(jnp.float32)


def _pick_hop(N: int) -> int:
    """Matmul column width: 128 everywhere except long FIRs on 256-wide MXUs."""
    if N - 1 < 256:
        return 128
    try:
        kind = jax.devices()[0].device_kind.lower()
    except Exception:
        return 128
    if any(tag in kind for tag in ("v2", "v3", "v4", "v5")):
        return 128          # 128-wide MXU generations (incl. v5e)
    return 256              # v6e / v7x: 2x256x256 MXU


# --------------------------------------------------------------------------- #
# Pallas kernel: one (batch, L-tile) step = block-Toeplitz accumulation on MXU
# --------------------------------------------------------------------------- #
def _conv_kernel(g_ref, xm_ref, xh_ref, o_ref, tail_ref, *,
                 channels, n_frames, group, hop, j_blocks, n_tail):
    # g_ref:    (1, J*hop, hop)        bf16  banded-Toeplitz FIR blocks
    # xm_ref:   (1, C, P,  hop)        bf16  main audio chunks of this tile
    # xh_ref:   (1, C, HC, hop)        bf16  right-halo chunks
    # o_ref:    (1, C, P,  hop)        out   filtered audio chunks
    # tail_ref: (C, n_tail*PG+HC, hop) bf16  staged tail+halo chunks (scratch)
    C, P, PG, J = channels, n_frames, group, j_blocks
    tail0 = P - n_tail * PG

    # Stage the last n_tail*PG main chunks plus the halo chunks contiguously so
    # that the groups whose sliding windows cross the tile boundary read a
    # single ref (tiny copy; everything else reads xm_ref directly).
    tail_ref[:, :n_tail * PG, :] = xm_ref[0, :, tail0:, :]
    tail_ref[:, n_tail * PG:, :] = xh_ref[0]

    def conv_group(lhs_rows):
        """acc = sum_j lhs_rows(j) @ G_j ; lhs_rows(j) is a (PG, hop) window."""
        acc = jnp.dot(lhs_rows(0), g_ref[0, :hop, :],
                      preferred_element_type=jnp.float32)
        for j in range(1, J):                       # static: J = ceil((N-1)/hop)+1
            acc += jnp.dot(lhs_rows(j), g_ref[0, j * hop:(j + 1) * hop, :],
                           preferred_element_type=jnp.float32)
        return acc

    n_interior = P // PG - n_tail
    for c in range(C):                              # C is small and static
        # Interior groups: every LHS window lies fully inside the main tile.
        if n_interior > 0:
            def body(gi, carry, c=c):
                g0 = pl.multiple_of(gi * PG, PG)
                acc = conv_group(
                    lambda j: xm_ref[0, c, pl.ds(g0 + j, PG), :])
                o_ref[0, c, pl.ds(g0, PG), :] = acc.astype(o_ref.dtype)
                return carry
            lax.fori_loop(0, n_interior, body, 0,
                          unroll=2 if n_interior >= 2 else 1)

        # Tail groups (static unroll): windows straddle into the halo; read the
        # staged contiguous scratch instead.
        for tg in range(n_tail):
            base = tg * PG
            acc = conv_group(
                lambda j, c=c, base=base: tail_ref[c, base + j:base + j + PG, :])
            o_ref[0, c, tail0 + base:tail0 + base + PG, :] = (
                acc.astype(o_ref.dtype))


# --------------------------------------------------------------------------- #
# Wrapper: FIR synthesis + banded-Toeplitz blocks (XLA glue) + pallas_call
# --------------------------------------------------------------------------- #
def zero_phase_fir_eq(input_signals: jnp.ndarray, log_magnitude: jnp.ndarray, *,
                      hop: int | None = None,
                      conv_dtype=jnp.bfloat16) -> jnp.ndarray:
    """Mono NewZeroPhaseFIREqualizer forward: (B,C,L), (B,1,K) -> (B,C,L)."""
    B, C, L = input_signals.shape
    Bm, C_eq, K = log_magnitude.shape
    assert Bm == B and C_eq == 1, "mono equalizer expects log_magnitude (B, 1, K)"
    # TODO(synk): stereo / midside channel configs and the triangular-filterbank
    # (use_filterbank=True) parameterization are not implemented here.

    N = 2 * K - 1                       # FIR length
    pad = K - 1                         # zero-phase delay compensation
    if hop is None:
        hop = _pick_hop(N)
    assert hop % _LANE == 0

    # ---- FIR synthesis, hoisted out of the grid (exact f32 irfft, no matmul).
    mag = jnp.exp(log_magnitude[:, 0, :].astype(jnp.float32))          # (B, K)
    fir = jnp.roll(jnp.fft.irfft(mag, n=N, axis=-1), pad, axis=-1)     # (B, N)
    fir = fir * _hann_window(N)[None, :]

    # ---- Geometry: hop-wide chunks, J FIR blocks, large lane-dense tiles.
    isz = jnp.dtype(conv_dtype).itemsize
    J = (N - 1 + hop - 1) // hop + 1 if N > 1 else 1   # nonzero (hop,hop) blocks
    HC = _round_up(max(J - 1, 1), 8)                   # halo chunks per step
    gran = HC * hop                                    # tile granularity
    target = max(32768, _round_up(-(-(512 * 1024) // (C * isz)), hop))
    tile = max(gran, min(_round_up(target, gran), _round_up(L, gran)))
    P = tile // hop                                    # output frames per tile
    n_tiles = -(-L // tile)
    total = n_tiles * tile + HC * hop                  # padded audio length

    # Row-group size of the in-kernel accumulator (bounds live vregs).
    PG = 8
    for cand in ((64, 32, 16, 8) if hop <= 128 else (32, 16, 8)):
        if cand <= P and P % cand == 0:
            PG = cand
            break
    n_groups = P // PG
    n_tail = min(n_groups, max(1, -(-(J - 1) // PG)))  # boundary-straddling groups

    # ---- Banded-Toeplitz FIR blocks: G[b, m, r] = fir[b, m - r], 0 <= m-r < N.
    m_idx = jnp.arange(J * hop)[:, None]
    r_idx = jnp.arange(hop)[None, :]
    diff = m_idx - r_idx
    g = jnp.where((diff >= 0) & (diff < N),
                  jnp.take(fir, jnp.clip(diff, 0, N - 1), axis=1),
                  0.0).astype(conv_dtype)              # (B, J*hop, hop)

    # ---- Zero-phase left pad + right round-up pad, cast to bf16, chunked view.
    # TODO(synk): edge handling could move in-kernel (masked edge chunks) to save
    # this extra HBM pass over the signal.
    xpad = jnp.pad(input_signals, ((0, 0), (0, 0), (pad, total - pad - L)))
    xpad = xpad.astype(conv_dtype).reshape(B, C, total // hop, hop)

    kernel = functools.partial(_conv_kernel, channels=C, n_frames=P, group=PG,
                               hop=hop, j_blocks=J, n_tail=n_tail)

    # ---- VMEM accounting (double-buffered blocks + tail scratch). Compare vs.
    # the smallest scoped default (16 MiB on v5e) and cap by physical VMEM
    # (64 MiB on v7x) minus headroom.
    osz = jnp.dtype(input_signals.dtype).itemsize
    est = (2 * (J * hop * hop * isz + C * tile * isz + C * HC * hop * isz
                + C * tile * osz)
           + C * (n_tail * PG + HC) * hop * isz)
    compiler_kwargs = dict(dimension_semantics=("parallel", "parallel"))
    if est > 16 * 1024 * 1024:
        try:
            cap = int(pltpu.get_tpu_info().vmem_capacity_bytes)
        except Exception:
            cap = 64 * 1024 * 1024
        compiler_kwargs["vmem_limit_bytes"] = int(
            min(max(2 * est, 32 * 1024 * 1024), (cap * 3) // 4))

    ratio = P // HC   # exact: tile is a multiple of HC*hop
    out4 = pl.pallas_call(
        kernel,
        out_shape=jax.ShapeDtypeStruct((B, C, n_tiles * P, hop),
                                       input_signals.dtype),
        grid_spec=pltpu.PrefetchScalarGridSpec(
            num_scalar_prefetch=0,
            # Both axes parallel; B*n_tiles >= 2 in typical configs keeps both
            # v7x TensorCores busy.
            grid=(B, n_tiles),
            in_specs=[
                # Banded-Toeplitz FIR blocks (constant over the inner t axis).
                pl.BlockSpec((1, J * hop, hop), lambda b, t: (b, 0, 0)),
                # Main audio chunks of this tile.
                pl.BlockSpec((1, C, P, hop), lambda b, t: (b, 0, t, 0)),
                # Right-halo chunks (the next HC chunks of the padded signal).
                pl.BlockSpec((1, C, HC, hop),
                             lambda b, t: (b, 0, (t + 1) * ratio, 0)),
            ],
            out_specs=pl.BlockSpec((1, C, P, hop), lambda b, t: (b, 0, t, 0)),
            scratch_shapes=[
                pltpu.VMEM((C, n_tail * PG + HC, hop), conv_dtype),
            ],
        ),
        compiler_params=pltpu.CompilerParams(**compiler_kwargs),
    )(g, xpad, xpad)

    return out4.reshape(B, C, n_tiles * tile)[..., :L]


# --------------------------------------------------------------------------- #
# Independent pure-JAX reference (FFT overlap) for a correctness check
# --------------------------------------------------------------------------- #
def _reference(input_signals, log_magnitude):
    B, C, L = input_signals.shape
    K = log_magnitude.shape[-1]
    N = 2 * K - 1
    mag = jnp.exp(log_magnitude.astype(jnp.float32))                # (B, 1, K)
    ir = jnp.fft.irfft(mag, n=N, axis=-1)                           # (B, 1, N)
    ir = jnp.roll(ir, K - 1, axis=-1)
    fir = ir * _hann_window(N)[None, None, :]
    nfft = L + N - 1
    X = jnp.fft.rfft(input_signals, n=nfft, axis=-1)
    H = jnp.fft.rfft(fir, n=nfft, axis=-1)
    full = jnp.fft.irfft(X * H, n=nfft, axis=-1)
    start = (N - 1) // 2
    return full[..., start:start + L].astype(input_signals.dtype)


# --------------------------------------------------------------------------- #
if __name__ == "__main__":
    key = jax.random.PRNGKey(0)
    k1, k2 = jax.random.split(key)

    # Small shapes consistent with the module: B=2, C=4 audio channels,
    # L=256 samples, K=16 frequency bins (mono eq -> C_eq=1), FIR length 31.
    B, C, L, K = 2, 4, 256, 16
    input_signals = jax.random.normal(k1, (B, C, L), dtype=jnp.float32)
    log_magnitude = 0.5 * jax.random.normal(k2, (B, 1, K), dtype=jnp.float32)

    out = jax.jit(zero_phase_fir_eq)(input_signals, log_magnitude)
    out = jax.block_until_ready(out)

    ref = _reference(input_signals, log_magnitude)
    assert out.shape == (B, C, L)
    scale = float(jnp.max(jnp.abs(ref))) + 1e-6
    max_err = float(jnp.max(jnp.abs(out - ref)))
    # Scale-aware tolerance: conv operands are deliberately bf16 on the MXU
    # (f32 accumulation), so allow ~1-2% of the output scale.
    assert max_err <= 2e-2 * scale, \
        f"mismatch vs FFT reference: max abs err {max_err} (scale {scale})"

    print("KERNEL_OK")
</pallas_src>

<mosaic_0001>
module attributes {stable_mosaic.version = 11 : i64} {
  func.func @_conv_kernel(%arg0: i32, %arg1: i32, %arg2: memref<1x256x128xbf16, #tpu.memory_space<vmem>>, %arg3: memref<1x4x8x128xbf16, #tpu.memory_space<vmem>>, %arg4: memref<1x4x8x128xbf16, #tpu.memory_space<vmem>>, %arg5: memref<1x4x8x128xf32, #tpu.memory_space<vmem>>, %arg6: memref<4x16x128xbf16, #tpu.memory_space<vmem>>) attributes {dimension_semantics = [#tpu.dimension_semantics<parallel>, #tpu.dimension_semantics<parallel>], iteration_bounds = array<i64: 2, 1>, scalar_prefetch = 0 : i64, scratch_operands = 1 : i64, tpu.core_type = #tpu.core_type<tc>, window_params = [{transform_indices = @transform_0, window_bounds = array<i64: 1, 256, 128>}, {transform_indices = @transform_1, window_bounds = array<i64: 1, 4, 8, 128>}, {transform_indices = @transform_2, window_bounds = array<i64: 1, 4, 8, 128>}, {transform_indices = @transform_3, window_bounds = array<i64: 1, 4, 8, 128>}]} {
    %c0 = arith.constant 0 : index
    %c0_0 = arith.constant 0 : index
    %c0_1 = arith.constant 0 : index
    %c0_2 = arith.constant 0 : index
    %0 = vector.load %arg3[%c0, %c0_0, %c0_1, %c0_2] : memref<1x4x8x128xbf16, #tpu.memory_space<vmem>>, vector<1x4x8x128xbf16>
    %1 = vector.shape_cast %0 : vector<1x4x8x128xbf16> to vector<4x8x128xbf16>
    %c0_3 = arith.constant 0 : index
    %c0_4 = arith.constant 0 : index
    %c0_5 = arith.constant 0 : index
    %2 = vector.load %arg6[%c0_3, %c0_4, %c0_5] : memref<4x16x128xbf16, #tpu.memory_space<vmem>>, vector<4x8x128xbf16>
    tpu.vector_store %arg6[%c0_3, %c0_4, %c0_5], %1 {strides = array<i32>} : memref<4x16x128xbf16, #tpu.memory_space<vmem>>, vector<4x8x128xbf16>,
    %c0_6 = arith.constant 0 : index
    %c0_7 = arith.constant 0 : index
    %c0_8 = arith.constant 0 : index
    %c0_9 = arith.constant 0 : index
    %3 = vector.load %arg4[%c0_6, %c0_7, %c0_8, %c0_9] : memref<1x4x8x128xbf16, #tpu.memory_space<vmem>>, vector<1x4x8x128xbf16>
    %4 = vector.shape_cast %3 : vector<1x4x8x128xbf16> to vector<4x8x128xbf16>
    %c0_10 = arith.constant 0 : index
    %c8 = arith.constant 8 : index
    %c0_11 = arith.constant 0 : index
    %5 = vector.load %arg6[%c0_10, %c8, %c0_11] : memref<4x16x128xbf16, #tpu.memory_space<vmem>>, vector<4x8x128xbf16>
    tpu.vector_store %arg6[%c0_10, %c8, %c0_11], %4 {strides = array<i32>} : memref<4x16x128xbf16, #tpu.memory_space<vmem>>, vector<4x8x128xbf16>,
    %c0_12 = arith.constant 0 : index
    %c0_13 = arith.constant 0 : index
    %c0_14 = arith.constant 0 : index
    %6 = vector.load %arg6[%c0_12, %c0_13, %c0_14] : memref<4x16x128xbf16, #tpu.memory_space<vmem>>, vector<1x8x128xbf16>
    %7 = vector.shape_cast %6 : vector<1x8x128xbf16> to vector<8x128xbf16>
    %c0_15 = arith.constant 0 : index
    %c0_16 = arith.constant 0 : index
    %c0_17 = arith.constant 0 : index
    %8 = vector.load %arg2[%c0_15, %c0_16, %c0_17] : memref<1x256x128xbf16, #tpu.memory_space<vmem>>, vector<1x128x128xbf16>
    %9 = vector.shape_cast %8 : vector<1x128x128xbf16> to vector<128x128xbf16>
    %cst = arith.constant dense<0.000000e+00> : vector<8x128xf32>
    %10 = tpu.matmul %7, %9, %cst {dimension_numbers = #tpu.dot_dimension_numbers<[1], [0], [0], [1], [0, 0, 1, 1], [], []>} : vector<8x128xbf16>, vector<128x128xbf16>, vector<8x128xf32> -> vector<8x128xf32>
    %c0_18 = arith.constant 0 : index
    %c1 = arith.constant 1 : index
    %c0_19 = arith.constant 0 : index
    %11 = vector.load %arg6[%c0_18, %c1, %c0_19] : memref<4x16x128xbf16, #tpu.memory_space<vmem>>, vector<1x8x128xbf16>
    %12 = vector.shape_cast %11 : vector<1x8x128xbf16> to vector<8x128xbf16>
    %c0_20 = arith.constant 0 : index
    %c128 = arith.constant 128 : index
    %c0_21 = arith.constant 0 : index
    %13 = vector.load %arg2[%c0_20, %c128, %c0_21] : memref<1x256x128xbf16, #tpu.memory_space<vmem>>, vector<1x128x128xbf16>
    %14 = vector.shape_cast %13 : vector<1x128x128xbf16> to vector<128x128xbf16>
    %cst_22 = arith.constant dense<0.000000e+00> : vector<8x128xf32>
    %15 = tpu.matmul %12, %14, %cst_22 {dimension_numbers = #tpu.dot_dimension_numbers<[1], [0], [0], [1], [0, 0, 1, 1], [], []>} : vector<8x128xbf16>, vector<128x128xbf16>, vector<8x128xf32> -> vector<8x128xf32>
    %16 = arith.addf %10, %15 : vector<8x128xf32>
    %c0_23 = arith.constant 0 : index
    %c0_24 = arith.constant 0 : index
    %c0_25 = arith.constant 0 : index
    %c0_26 = arith.constant 0 : index
    %17 = vector.load %arg5[%c0_23, %c0_24, %c0_25, %c0_26] : memref<1x4x8x128xf32, #tpu.memory_space<vmem>>, vector<1x1x8x128xf32>
    %18 = vector.shape_cast %17 : vector<1x1x8x128xf32> to vector<8x128xf32>
    %19 = vector.shape_cast %16 : vector<8x128xf32> to vector<1x1x8x128xf32>
    tpu.vector_store %arg5[%c0_23, %c0_24, %c0_25, %c0_26], %19 {strides = array<i32>} : memref<1x4x8x128xf32, #tpu.memory_space<vmem>>, vector<1x1x8x128xf32>,
    %c1_27 = arith.constant 1 : index
    %c0_28 = arith.constant 0 : index
    %c0_29 = arith.constant 0 : index
    %20 = vector.load %arg6[%c1_27, %c0_28, %c0_29] : memref<4x16x128xbf16, #tpu.memory_space<vmem>>, vector<1x8x128xbf16>
    %21 = vector.shape_cast %20 : vector<1x8x128xbf16> to vector<8x128xbf16>
    %c0_30 = arith.constant 0 : index
    %c0_31 = arith.constant 0 : index
    %c0_32 = arith.constant 0 : index
    %22 = vector.load %arg2[%c0_30, %c0_31, %c0_32] : memref<1x256x128xbf16, #tpu.memory_space<vmem>>, vector<1x128x128xbf16>
    %23 = vector.shape_cast %22 : vector<1x128x128xbf16> to vector<128x128xbf16>
    %cst_33 = arith.constant dense<0.000000e+00> : vector<8x128xf32>
    %24 = tpu.matmul %21, %23, %cst_33 {dimension_numbers = #tpu.dot_dimension_numbers<[1], [0], [0], [1], [0, 0, 1, 1], [], []>} : vector<8x128xbf16>, vector<128x128xbf16>, vector<8x128xf32> -> vector<8x128xf32>
    %c1_34 = arith.constant 1 : index
    %c1_35 = arith.constant 1 : index
    %c0_36 = arith.constant 0 : index
    %25 = vector.load %arg6[%c1_34, %c1_35, %c0_36] : memref<4x16x128xbf16, #tpu.memory_space<vmem>>, vector<1x8x128xbf16>
    %26 = vector.shape_cast %25 : vector<1x8x128xbf16> to vector<8x128xbf16>
    %c0_37 = arith.constant 0 : index
    %c128_38 = arith.constant 128 : index
    %c0_39 = arith.constant 0 : index
    %27 = vector.load %arg2[%c0_37, %c128_38, %c0_39] : memref<1x256x128xbf16, #tpu.memory_space<vmem>>, vector<1x128x128xbf16>
    %28 = vector.shape_cast %27 : vector<1x128x128xbf16> to vector<128x128xbf16>
    %cst_40 = arith.constant dense<0.000000e+00> : vector<8x128xf32>
    %29 = tpu.matmul %26, %28, %cst_40 {dimension_numbers = #tpu.dot_dimension_numbers<[1], [0], [0], [1], [0, 0, 1, 1], [], []>} : vector<8x128xbf16>, vector<128x128xbf16>, vector<8x128xf32> -> vector<8x128xf32>
    %30 = arith.addf %24, %29 : vector<8x128xf32>
    %c0_41 = arith.constant 0 : index
    %c1_42 = arith.constant 1 : index
    %c0_43 = arith.constant 0 : index
    %c0_44 = arith.constant 0 : index
    %31 = vector.load %arg5[%c0_41, %c1_42, %c0_43, %c0_44] : memref<1x4x8x128xf32, #tpu.memory_space<vmem>>, vector<1x1x8x128xf32>
    %32 = vector.shape_cast %31 : vector<1x1x8x128xf32> to vector<8x128xf32>
    %33 = vector.shape_cast %30 : vector<8x128xf32> to vector<1x1x8x128xf32>
    tpu.vector_store %arg5[%c0_41, %c1_42, %c0_43, %c0_44], %33 {strides = array<i32>} : memref<1x4x8x128xf32, #tpu.memory_space<vmem>>, vector<1x1x8x128xf32>,
    %c2 = arith.constant 2 : index
    %c0_45 = arith.constant 0 : index
    %c0_46 = arith.constant 0 : index
    %34 = vector.load %arg6[%c2, %c0_45, %c0_46] : memref<4x16x128xbf16, #tpu.memory_space<vmem>>, vector<1x8x128xbf16>
    %35 = vector.shape_cast %34 : vector<1x8x128xbf16> to vector<8x128xbf16>
    %c0_47 = arith.constant 0 : index
    %c0_48 = arith.constant 0 : index
    %c0_49 = arith.constant 0 : index
    %36 = vector.load %arg2[%c0_47, %c0_48, %c0_49] : memref<1x256x128xbf16, #tpu.memory_space<vmem>>, vector<1x128x128xbf16>
    %37 = vector.shape_cast %36 : vector<1x128x128xbf16> to vector<128x128xbf16>
    %cst_50 = arith.constant dense<0.000000e+00> : vector<8x128xf32>
    %38 = tpu.matmul %35, %37, %cst_50 {dimension_numbers = #tpu.dot_dimension_numbers<[1], [0], [0], [1], [0, 0, 1, 1], [], []>} : vector<8x128xbf16>, vector<128x128xbf16>, vector<8x128xf32> -> vector<8x128xf32>
    %c2_51 = arith.constant 2 : index
    %c1_52 = arith.constant 1 : index
    %c0_53 = arith.constant 0 : index
    %39 = vector.load %arg6[%c2_51, %c1_52, %c0_53] : memref<4x16x128xbf16, #tpu.memory_space<vmem>>, vector<1x8x128xbf16>
    %40 = vector.shape_cast %39 : vector<1x8x128xbf16> to vector<8x128xbf16>
    %c0_54 = arith.constant 0 : index
    %c128_55 = arith.constant 128 : index
    %c0_56 = arith.constant 0 : index
    %41 = vector.load %arg2[%c0_54, %c128_55, %c0_56] : memref<1x256x128xbf16, #tpu.memory_space<vmem>>, vector<1x128x128xbf16>
    %42 = vector.shape_cast %41 : vector<1x128x128xbf16> to vector<128x128xbf16>
    %cst_57 = arith.constant dense<0.000000e+00> : vector<8x128xf32>
    %43 = tpu.matmul %40, %42, %cst_57 {dimension_numbers = #tpu.dot_dimension_numbers<[1], [0], [0], [1], [0, 0, 1, 1], [], []>} : vector<8x128xbf16>, vector<128x128xbf16>, vector<8x128xf32> -> vector<8x128xf32>
    %44 = arith.addf %38, %43 : vector<8x128xf32>
    %c0_58 = arith.constant 0 : index
    %c2_59 = arith.constant 2 : index
    %c0_60 = arith.constant 0 : index
    %c0_61 = arith.constant 0 : index
    %45 = vector.load %arg5[%c0_58, %c2_59, %c0_60, %c0_61] : memref<1x4x8x128xf32, #tpu.memory_space<vmem>>, vector<1x1x8x128xf32>
    %46 = vector.shape_cast %45 : vector<1x1x8x128xf32> to vector<8x128xf32>
    %47 = vector.shape_cast %44 : vector<8x128xf32> to vector<1x1x8x128xf32>
    tpu.vector_store %arg5[%c0_58, %c2_59, %c0_60, %c0_61], %47 {strides = array<i32>} : memref<1x4x8x128xf32, #tpu.memory_space<vmem>>, vector<1x1x8x128xf32>,
    %c3 = arith.constant 3 : index
    %c0_62 = arith.constant 0 : index
    %c0_63 = arith.constant 0 : index
    %48 = vector.load %arg6[%c3, %c0_62, %c0_63] : memref<4x16x128xbf16, #tpu.memory_space<vmem>>, vector<1x8x128xbf16>
    %49 = vector.shape_cast %48 : vector<1x8x128xbf16> to vector<8x128xbf16>
    %c0_64 = arith.constant 0 : index
    %c0_65 = arith.constant 0 : index
    %c0_66 = arith.constant 0 : index
    %50 = vector.load %arg2[%c0_64, %c0_65, %c0_66] : memref<1x256x128xbf16, #tpu.memory_space<vmem>>, vector<1x128x128xbf16>
    %51 = vector.shape_cast %50 : vector<1x128x128xbf16> to vector<128x128xbf16>
    %cst_67 = arith.constant dense<0.000000e+00> : vector<8x128xf32>
    %52 = tpu.matmul %49, %51, %cst_67 {dimension_numbers = #tpu.dot_dimension_numbers<[1], [0], [0], [1], [0, 0, 1, 1], [], []>} : vector<8x128xbf16>, vector<128x128xbf16>, vector<8x128xf32> -> vector<8x128xf32>
    %c3_68 = arith.constant 3 : index
    %c1_69 = arith.constant 1 : index
    %c0_70 = arith.constant 0 : index
    %53 = vector.load %arg6[%c3_68, %c1_69, %c0_70] : memref<4x16x128xbf16, #tpu.memory_space<vmem>>, vector<1x8x128xbf16>
    %54 = vector.shape_cast %53 : vector<1x8x128xbf16> to vector<8x128xbf16>
    %c0_71 = arith.constant 0 : index
    %c128_72 = arith.constant 128 : index
    %c0_73 = arith.constant 0 : index
    %55 = vector.load %arg2[%c0_71, %c128_72, %c0_73] : memref<1x256x128xbf16, #tpu.memory_space<vmem>>, vector<1x128x128xbf16>
    %56 = vector.shape_cast %55 : vector<1x128x128xbf16> to vector<128x128xbf16>
    %cst_74 = arith.constant dense<0.000000e+00> : vector<8x128xf32>
    %57 = tpu.matmul %54, %56, %cst_74 {dimension_numbers = #tpu.dot_dimension_numbers<[1], [0], [0], [1], [0, 0, 1, 1], [], []>} : vector<8x128xbf16>, vector<128x128xbf16>, vector<8x128xf32> -> vector<8x128xf32>
    %58 = arith.addf %52, %57 : vector<8x128xf32>
    %c0_75 = arith.constant 0 : index
    %c3_76 = arith.constant 3 : index
    %c0_77 = arith.constant 0 : index
    %c0_78 = arith.constant 0 : index
    %59 = vector.load %arg5[%c0_75, %c3_76, %c0_77, %c0_78] : memref<1x4x8x128xf32, #tpu.memory_space<vmem>>, vector<1x1x8x128xf32>
    %60 = vector.shape_cast %59 : vector<1x1x8x128xf32> to vector<8x128xf32>
    %61 = vector.shape_cast %58 : vector<8x128xf32> to vector<1x1x8x128xf32>
    tpu.vector_store %arg5[%c0_75, %c3_76, %c0_77, %c0_78], %61 {strides = array<i32>} : memref<1x4x8x128xf32, #tpu.memory_space<vmem>>, vector<1x1x8x128xf32>,
    return
  }
  func.func @transform_0(%arg0: i32, %arg1: i32) -> (i32, i32, i32) {
    %c0_i32 = arith.constant 0 : i32
    %c0_i32_0 = arith.constant 0 : i32
    %c0_i32_1 = arith.constant 0 : i32
    return %arg0, %c0_i32, %c0_i32_0 : i32, i32, i32
  }
  func.func @transform_1(%arg0: i32, %arg1: i32) -> (i32, i32, i32, i32) {
    %c0_i32 = arith.constant 0 : i32
    %c0_i32_0 = arith.constant 0 : i32
    %c0_i32_1 = arith.constant 0 : i32
    return %arg0, %c0_i32, %arg1, %c0_i32_0 : i32, i32, i32, i32
  }
  func.func @transform_2(%arg0: i32, %arg1: i32) -> (i32, i32, i32, i32) {
    %c1_i32 = arith.constant 1 : i32
    %0 = arith.addi %arg1, %c1_i32 : i32
    %c1_i32_0 = arith.constant 1 : i32
    %1 = arith.muli %0, %c1_i32_0 : i32
    %c0_i32 = arith.constant 0 : i32
    %c0_i32_1 = arith.constant 0 : i32
    %c0_i32_2 = arith.constant 0 : i32
    return %arg0, %c0_i32, %1, %c0_i32_1 : i32, i32, i32, i32
  }
  func.func @transform_3(%arg0: i32, %arg1: i32) -> (i32, i32, i32, i32) {
    %c0_i32 = arith.constant 0 : i32
    %c0_i32_0 = arith.constant 0 : i32
    %c0_i32_1 = arith.constant 0 : i32
    return %arg0, %c0_i32, %arg1, %c0_i32_0 : i32, i32, i32, i32
  }
}

</mosaic_0001>

<bundles_post_ra>
// kernel: reverse.1
= control target key start
LH: loop header
LB: loop body
LE: loop exit
PB: predicated region body
PF: predicated region fallthrough
CT: control target
= control target key end

     0   :  { %v2_v0 = vlaneseq  ;;  %s112_s0 = inlined_call_operand.vmem [shape: f32[2,15], index: 0, kind: input, shape index: {}]   ;;  %s113_s1 = inlined_call_operand.vmem [shape: f32[2,15], index: 1, kind: output, shape index: {}]  }
   0x2   :  { %v3_v1 = vsub.s32 14, %v2_v0 }
   0x4   :  { %4 = vset.pattern.permute.xlu0 %v3_v1 }
   0x5   :  { %v21_v2 = vld [vmem:[%s112_s0] sm:$0x3] }
   0x6   :  { %22 = vst [vmem:[#allocation1] sm:$0x3] %v21_v2 }
   0xd   :  { %v41_v3 = vld [vmem:[#allocation1] sm:$0x3] }
   0xe   :  { %42 = vst [vmem:[#allocation0] sm:$0x3] %v41_v3 }
  0x15   :  { %v43_v4 = vld [vmem:[#allocation0] sm:$0xff] }
  0x16   :  { %44 = vperm.xlu0 %4, %v43_v4  }
  0x91   :  { %v45_v5 = vpop.permute.xlu0 %44 }
  0x92   :  { %46 = vst [vmem:[#allocation2] sm:$0xff] %v45_v5 }
  0x99   :  { %v51_v6 = vld [vmem:[#allocation2] sm:$0x3] }
  0x9a   :  { %54 = vst [vmem:[#allocation3] sm:$0x3] %v51_v6 }
  0xa1   :  { %v71_v7 = vld [vmem:[#allocation3] sm:$0x3] }
  0xa2   :  { %72 = vst [vmem:[%s113_s1] sm:$0x3] %v71_v7 }

// kernel: zero_phase_fir_eq.1
= control target key start
LH: loop header
LB: loop body
LE: loop exit
PB: predicated region body
PF: predicated region fallthrough
CT: control target
= control target key end

     0   :  { %s1892_s12 = smov 0   ;;  %s1894_s13 = smov 0   ;;  %s2142_s0 = inlined_call_operand.vmem [shape: bf16[2,256,128], index: 0, kind: input, shape index: {}]   ;;  %s2143_s1 = inlined_call_operand.vmem [shape: bf16[2,4,16,128], index: 1, kind: input, shape index: {}, may-alias: {1,2}]   ;;  %s2144_s2 = inlined_call_operand.vmem [shape: bf16[2,4,16,128], index: 2, kind: input, shape index: {}, may-alias: {1,2}]   ;;  %s2145_s3 = inlined_call_operand.vmem [shape: f32[2,4,8,128], index: 3, kind: output, shape index: {}]  }
   0x1   :  { %s1896_s14 = smov 0   ;;  %s1898_s15 = smov 0  }
   0x2   :  { %s1900_s16 = smov 0  }
   0x3 LB: > { %s25_s17 = sadd.s32 1, %s1864_s15  ;;  %p67_p1 = scmp.ne.s32.totalorder %s1856_s13, %s1852_s12  ;;  %s1868_s16 = sphi %s1900_s16, %s13_s16   ;;  %s1864_s15 = sphi %s1898_s15, %s2150_s15   ;;  %s1860_s14 = sphi %s1896_s14, %s2149_s14   ;;  %s1856_s13 = sphi %s1894_s13, %s2148_s13   ;;  %s1852_s12 = sphi %s1892_s12, %s2147_s12  }
   0x4   : > { %p27_p0 = scmp.ge.s32.totalorder %s25_s17, 2  ;;  %p68_p2 = scmp.eq.s32.totalorder %s1868_s16, 0 }
   0x5   : > { %s60_s20 = sadd.s32 1, %s1856_s13  ;;  %p1393_p5 = scmp.ge.s32.totalorder %s1868_s16, 2 }
   0x6   : > { %s2152_s17 = smov (%p27_p0, %s25_s17), 0  ;;  %p1923_p3 = por %p68_p2, %p67_p1 }
   0x7   : > { %s55_s19 = ssub.s32 %s1864_s15, %s2152_s17  ;;  %151 = sbr.rel (%p1393_p5) target bundleno = 24 (0x18), region = 16 }
   0x8   : > { %p58_p4 = scmp.eq.s32.totalorder %s55_s19, 0 }
   0xa   : > { %s1931_s21 = scalar_select %p58_p4, %s1856_s13, %s60_s20  }
   0xc   : > { %162 = sbr.rel (!%p1923_p3) target bundleno = 18 (0x12), region = 24  ;;  %s164_s22 = sand.u32 (%p1923_p3), 1, %s1856_s13  }
   0xd   : > { %s1484_s23 = sshll.u32 (%p1923_p3), %s1864_s15, 5  ;;  %s1394_s24 = sshll.u32 (%p1923_p3), %s164_s22, 4 }
   0xe   : > { %s170_s27 = scalar_lea.vmem (%p1923_p3), %s2143_s1, %s1484_s23  ;;  %s166_s28 = scalar_lea.vmem (%p1923_p3), [#allocation3], %s1394_s24 }
   0xf   : > { %v187_v0 = vld [vmem:[%s170_s27] sm:$0xf] (%p1923_p3)  ;;  %v189_v1 = vld [vmem:[%s170_s27 + $0x8] sm:$0xf] (%p1923_p3)  ;;  %v191_v2 = vld [vmem:[%s170_s27 + $0x10] sm:$0xf] (%p1923_p3) }
  0x10   : > { %188 = vst [vmem:[%s166_s28] sm:$0xf] (%p1923_p3), %v187_v0  ;;  %190 = vst [vmem:[%s166_s28 + $0x4] sm:$0xf] (%p1923_p3), %v189_v1  ;;  %v193_v3 = vld [vmem:[%s170_s27 + $0x18] sm:$0xf] (%p1923_p3) }
  0x11   : > { %192 = vst [vmem:[%s166_s28 + $0x8] sm:$0xf] %v191_v2  ;;  %194 = vst [vmem:[%s166_s28 + $0xc] sm:$0xf] %v193_v3 }
  0x12 PF: > { %226 = sbr.rel (!%p1923_p3) target bundleno = 24 (0x18), region = 65  ;;  %s228_s29 = sand.u32 (%p1923_p3), 1, %s1856_s13  }
  0x13   : > { %s1485_s30 = sshll.u32 (%p1923_p3), %s1864_s15, 5  ;;  %s1397_s4 = sshll.u32 (%p1923_p3), %s228_s29, 4 }
  0x14   : > { %s1312_s7 = scalar_lea.vmem (%p1923_p3), %s2144_s2, %s1485_s30  ;;  %s230_s8 = scalar_lea.vmem (%p1923_p3), [#allocation4], %s1397_s4 }
  0x15   : > { %v1400_v4 = vld [vmem:[%s1312_s7 + $0x4] sm:$0xf] (%p1923_p3)  ;;  %v1401_v5 = vld [vmem:[%s1312_s7 + $0xc] sm:$0xf] (%p1923_p3)  ;;  %v1402_v6 = vld [vmem:[%s1312_s7 + $0x14] sm:$0xf] (%p1923_p3) }
  0x16   : > { %253 = vst [vmem:[%s230_s8] sm:$0xf] (%p1923_p3), %v1400_v4  ;;  %255 = vst [vmem:[%s230_s8 + $0x4] sm:$0xf] (%p1923_p3), %v1401_v5  ;;  %v1403_v7 = vld [vmem:[%s1312_s7 + $0x1c] sm:$0xf] (%p1923_p3) }
  0x17   : > { %257 = vst [vmem:[%s230_s8 + $0x8] sm:$0xf] %v1402_v6  ;;  %259 = vst [vmem:[%s230_s8 + $0xc] sm:$0xf] %v1403_v7 }
  0x18 PF: > { %p1404_p6 = scmp.ge.s32.totalorder %s1868_s16, 1  ;;  %p290_p7 = scmp.lt.s32.totalorder %s1868_s16, 3 }
  0x1a   : > { %p291_p8 = pnand %p1404_p6, %p290_p7 }
  0x1b   : > { %p339_p9 = scmp.lt.s32.totalorder (!%p291_p8), %s1860_s14, 1  ;;  %s297_s9 = sand.u32 (!%p291_p8), 1, %s1852_s12  }
  0x1c   : > { %294 = sbr.rel (%p291_p8) target bundleno = 364 (0x16c), region = 106  ;;  %s1405_s10 = sshll.u32 (!%p291_p8), %s297_s9, 4 }
  0x1d   : > { %s1962_s18 = scalar_lea.vmem (!%p291_p8), [#allocation3], %s1405_s10  ;;  %s1965_s12 = scalar_lea.vmem (!%p291_p8), [#allocation4], %s1405_s10 }
  0x21   : > { %v1870_v8 = vmov 0.0   ;;  %s2154_s14 = smov (!%p339_p9, %s1860_s14), 1  ;;  %vm1871_vm0 = vmmov 0   ;;  %v354_v9 = vld [vmem:[%s1962_s18] sm:$0xf] }
  0x22   : > { %1560 = vmatprep.subr.bf16.mxu0 %v1870_v8  ;;  %1580 = vmatprep.subr.bf16.mxu1 %v1870_v8  ;;  %s1486_s11 = sshll.u32 %s2154_s14, 7  ;;  %v362_v10 = vld [vmem:[%s1965_s12] sm:$0xf]  ;;  %358 = vst [vmem:[#allocation2] sm:$0xf] %v354_v9  ;;  %s1487_s23 = sshll.u32 %s2154_s14, 5 }
  0x23   : > { %1576 = vmatprep.mubr.msk.bf16.mxu0 %vm1871_vm0, %v1870_v8  ;;  %1596 = vmatprep.mubr.msk.bf16.mxu1 %vm1871_vm0, %v1870_v8  ;;  %s1971_s22 = scalar_lea.vmem %s2142_s0, %s1486_s11  ;;  %366 = vst [vmem:[#allocation2 + $0x4] sm:$0xf] %v362_v10  ;;  %v355_v11 = vld [vmem:[%s1962_s18 + $0x4] sm:$0xf]  ;;  %v356_v13 = vld [vmem:[%s1962_s18 + $0x8] sm:$0xf]  ;;  %s2121_s26 = scalar_lea.vmem %s2145_s3, %s1487_s23 }
  0x24   : > { %v363_v12 = vld [vmem:[%s1965_s12 + $0x4] sm:$0xf]  ;;  %v1762_v14 = vld [vmem:[%s1971_s22 + $0x78] sm:$0xff]   ;;  %359 = vst [vmem:[#allocation2 + $0x8] sm:$0xf] %v355_v11  ;;  %v1766_v18 = vld [vmem:[%s1971_s22 + $0x68] sm:$0xff]  }
  0x25   : > { %367 = vst [vmem:[#allocation2 + $0xc] sm:$0xf] %v363_v12  ;;  %360 = vst [vmem:[#allocation2 + $0x10] sm:$0xf] %v356_v13  ;;  %v1763_v15 = vld [vmem:[%s1971_s22 + $0x38] sm:$0xff]   ;;  %1561 = vmatpush3.bf16.msra.mxu0 %v1762_v14  ;;  %v1764_v16 = vld [vmem:[%s1971_s22 + $0x70] sm:$0xff]  }
  0x26   : > { %1581 = vmatpush3.bf16.msra.mxu1 %v1763_v15  ;;  %1562 = vmatprep.subr.bf16.mxu0 %v1870_v8  ;;  %v1765_v17 = vld [vmem:[%s1971_s22 + $0x30] sm:$0xff]   ;;  %v1767_v19 = vld [vmem:[%s1971_s22 + $0x28] sm:$0xff]   ;;  %v1768_v20 = vld [vmem:[%s1971_s22 + $0x60] sm:$0xff]  }
  0x27   : > { %1582 = vmatprep.subr.bf16.mxu1 %v1870_v8  ;;  %v1769_v21 = vld [vmem:[%s1971_s22 + $0x20] sm:$0xff]   ;;  %v1770_v22 = vld [vmem:[%s1971_s22 + $0x58] sm:$0xff]   ;;  %v1772_v27 = vld [vmem:[%s1971_s22 + $0x50] sm:$0xff]  }
  0x28   : > { %v1771_v23 = vld [vmem:[%s1971_s22 + $0x18] sm:$0xff]   ;;  %v1773_v28 = vld [vmem:[%s1971_s22 + $0x10] sm:$0xff]   ;;  %v1774_v30 = vld [vmem:[%s1971_s22 + $0x48] sm:$0xff]  }
  0x29   : > { %1563 = vmatpush3.bf16.msra.mxu0 %v1764_v16  ;;  %v370_v24 = vld [vmem:[#allocation2] sm:$0xf]  ;;  %v1775_v31 = vld [vmem:[%s1971_s22 + $0x8] sm:$0xff]   ;;  %v1779_v37 = vld [vmem:[%s1971_s22 + $0x78] sm:$0xff]  }
  0x2a   : > { %1583 = vmatpush3.bf16.msra.mxu1 %v1765_v17  ;;  %1564 = vmatprep.subr.bf16.mxu0 %v1870_v8  ;;  %v387_v25 = vld [vmem:[#allocation2 + $0x4] sm:$0x1]  ;;  %v1780_v38 = vld [vmem:[%s1971_s22 + $0x38] sm:$0xff]   ;;  %v1781_v39 = vld [vmem:[%s1971_s22 + $0x70] sm:$0xff]  }
  0x2b   : > { %1584 = vmatprep.subr.bf16.mxu1 %v1870_v8  ;;  %v1411_v26 = vcombine.low %v370_v24, %v387_v25  ;;  %v1776_v34 = vld [vmem:[%s1971_s22 + $0x40] sm:$0xff]   ;;  %v1782_v40 = vld [vmem:[%s1971_s22 + $0x30] sm:$0xff]   ;;  %v1783_v41 = vld [vmem:[%s1971_s22 + $0x68] sm:$0xff]  }
  0x2c   : > { %v1777_v35 = vld [vmem:[%s1971_s22] sm:$0xff]   ;;  %v1784_v42 = vld [vmem:[%s1971_s22 + $0x28] sm:$0xff]   ;;  %v1787_v45 = vld [vmem:[%s1971_s22 + $0x58] sm:$0xff]  }
  0x2d   : > { %1565 = vmatpush3.bf16.msra.mxu0 %v1766_v18  ;;  %v412_v29 = vshll.u32 %v1411_v26, 16  ;;  %v410_v32 = vshrl.u32 %v1411_v26, 16  ;;  %v1785_v43 = vld [vmem:[%s1971_s22 + $0x60] sm:$0xff]   ;;  %v595_v46 = vld [vmem:[#allocation2 + $0x8] sm:$0xf]  ;;  %v1788_v48 = vld [vmem:[%s1971_s22 + $0x18] sm:$0xff]  }
  0x2e   : > { %1585 = vmatpush3.bf16.msra.mxu1 %v1767_v19  ;;  %1566 = vmatprep.subr.bf16.mxu0 %v1870_v8  ;;  %v1786_v44 = vld [vmem:[%s1971_s22 + $0x20] sm:$0xff]   ;;  %v612_v47 = vld [vmem:[#allocation2 + $0xc] sm:$0x1]  ;;  %v364_v50 = vld [vmem:[%s1965_s12 + $0x8] sm:$0xf] }
  0x2f   : > { %1586 = vmatprep.subr.bf16.mxu1 %v1870_v8  ;;  %v414_v33 = vrot.slane %v412_v29, 1  ;;  %v1428_v49 = vcombine.low %v595_v46, %v612_v47  ;;  %v1789_v51 = vld [vmem:[%s1971_s22 + $0x50] sm:$0xff]   ;;  %368 = vst [vmem:[#allocation2 + $0x14] sm:$0xf] %v364_v50  ;;  %v1791_v54 = vld [vmem:[%s1971_s22 + $0x48] sm:$0xff]   ;;  %v1793_v58 = vld [vmem:[%s1971_s22 + $0x40] sm:$0xff]  }
  0x30   : > { %v1790_v52 = vld [vmem:[%s1971_s22 + $0x10] sm:$0xff]   ;;  %v1792_v55 = vld [vmem:[%s1971_s22 + $0x8] sm:$0xff]   ;;  %v1794_v59 = vld [vmem:[%s1971_s22] sm:$0xff]  }
  0x31   : > { %1567 = vmatpush3.bf16.msra.mxu0 %v1768_v20  ;;  %v415_v36 = vor.u32 %v414_v33, %v410_v32  ;;  %v637_v53 = vshll.u32 %v1428_v49, 16  ;;  %v635_v56 = vshrl.u32 %v1428_v49, 16  ;;  %v1796_v61 = vld [vmem:[%s1971_s22 + $0x78] sm:$0xff]   ;;  %v1798_v63 = vld [vmem:[%s1971_s22 + $0x70] sm:$0xff]   ;;  %v1800_v3 = vld [vmem:[%s1971_s22 + $0x68] sm:$0xff]  }
  0x32   : > { %1587 = vmatpush3.bf16.msra.mxu1 %v1769_v21  ;;  %1568 = vmatprep.subr.bf16.mxu0 %v1870_v8  ;;  %v1797_v62 = vld [vmem:[%s1971_s22 + $0x38] sm:$0xff]   ;;  %v1799_v2 = vld [vmem:[%s1971_s22 + $0x30] sm:$0xff]   ;;  %v1801_v4 = vld [vmem:[%s1971_s22 + $0x28] sm:$0xff]  }
  0x33   : > { %1588 = vmatprep.subr.bf16.mxu1 %v1870_v8  ;;  %v639_v57 = vrot.slane %v637_v53, 1  ;;  %v357_v0 = vld [vmem:[%s1962_s18 + $0xc] sm:$0xf]  ;;  %v1802_v5 = vld [vmem:[%s1971_s22 + $0x60] sm:$0xff]   ;;  %v821_v9 = vld [vmem:[#allocation2 + $0x10] sm:$0xf] }
  0x34   : > { %v365_v1 = vld [vmem:[%s1965_s12 + $0xc] sm:$0xf]  ;;  %361 = vst [vmem:[#allocation2 + $0x18] sm:$0xf] %v357_v0  ;;  %v1803_v6 = vld [vmem:[%s1971_s22 + $0x20] sm:$0xff]   ;;  %v1806_v13 = vld [vmem:[%s1971_s22 + $0x50] sm:$0xff]  }
  0x35   : > { %1569 = vmatpush3.bf16.msra.mxu0 %v1770_v22  ;;  %v640_v60 = vor.u32 %v639_v57, %v635_v56  ;;  %369 = vst [vmem:[#allocation2 + $0x1c] sm:$0xf] %v365_v1  ;;  %v1804_v7 = vld [vmem:[%s1971_s22 + $0x58] sm:$0xff]   ;;  %v1807_v14 = vld [vmem:[%s1971_s22 + $0x10] sm:$0xff]   ;;  %v1808_v16 = vld [vmem:[%s1971_s22 + $0x48] sm:$0xff]  }
  0x36   : > { %1589 = vmatpush3.bf16.msra.mxu1 %v1771_v23  ;;  %1570 = vmatprep.subr.bf16.mxu0 %v1870_v8  ;;  %v838_v10 = vld [vmem:[#allocation2 + $0x14] sm:$0x1]  ;;  %v1805_v11 = vld [vmem:[%s1971_s22 + $0x18] sm:$0xff]   ;;  %v1809_v17 = vld [vmem:[%s1971_s22 + $0x8] sm:$0xff]  }
  0x37   : > { %1590 = vmatprep.subr.bf16.mxu1 %v1870_v8  ;;  %v1446_v12 = vcombine.low %v821_v9, %v838_v10  ;;  %v1810_v20 = vld [vmem:[%s1971_s22 + $0x40] sm:$0xff]   ;;  %v1813_v23 = vld [vmem:[%s1971_s22 + $0x78] sm:$0xff]   ;;  %v1815_v25 = vld [vmem:[%s1971_s22 + $0x70] sm:$0xff]  }
  0x38   : > { %v1811_v21 = vld [vmem:[%s1971_s22] sm:$0xff]   ;;  %v1816_v26 = vld [vmem:[%s1971_s22 + $0x30] sm:$0xff]  }
  0x39   : > { %1571 = vmatpush3.bf16.msra.mxu0 %v1772_v27  ;;  %v863_v15 = vshll.u32 %v1446_v12, 16  ;;  %v861_v18 = vshrl.u32 %v1446_v12, 16  ;;  %v1817_v27 = vld [vmem:[%s1971_s22 + $0x68] sm:$0xff]   ;;  %v1819_v29 = vld [vmem:[%s1971_s22 + $0x60] sm:$0xff]  }
  0x3a   : > { %1591 = vmatpush3.bf16.msra.mxu1 %v1773_v28  ;;  %1572 = vmatprep.subr.bf16.mxu0 %v1870_v8  ;;  %v1818_v28 = vld [vmem:[%s1971_s22 + $0x28] sm:$0xff]  }
  0x3b   : > { %1592 = vmatprep.subr.bf16.mxu1 %v1870_v8  ;;  %v865_v19 = vrot.slane %v863_v15, 1  ;;  %v1047_v32 = vld [vmem:[#allocation2 + $0x18] sm:$0xf] }
  0x3c   : > { %v1064_v33 = vld [vmem:[#allocation2 + $0x1c] sm:$0x1] }
  0x3d   : > { %1573 = vmatpush3.bf16.msra.mxu0 %v1774_v30  ;;  %v866_v22 = vor.u32 %v865_v19, %v861_v18  ;;  %v1820_v30 = vld [vmem:[%s1971_s22 + $0x20] sm:$0xff]  }
  0x3e   : > { %1593 = vmatpush3.bf16.msra.mxu1 %v1775_v31  ;;  %1574 = vmatprep.subr.bf16.mxu0 %v1870_v8  ;;  %v1821_v31 = vld [vmem:[%s1971_s22 + $0x58] sm:$0xff]  }
  0x3f   : > { %1594 = vmatprep.subr.bf16.mxu1 %v1870_v8 }
  0x41   : > { %1575 = vmatpush3.bf16.msra.mxu0 %v1776_v34  ;;  %v1822_v34 = vld [vmem:[%s1971_s22 + $0x18] sm:$0xff]  }
  0x42   : > { %1595 = vmatpush3.bf16.msra.mxu1 %v1777_v35  ;;  %1600 = vmatprep.subr.bf16.mxu0 %v1870_v8  ;;  %v1464_v35 = vcombine.low %v1047_v32, %v1064_v33 }
  0x43   : > { %1620 = vmatprep.subr.bf16.mxu1 %v1870_v8 }
  0x44   : > { %1577 = vmatmul.mubr.bf16.vlgmr.msra.gmra.mxu0 %v415_v36  ;;  %v1823_v36 = vld [vmem:[%s1971_s22 + $0x50] sm:$0xff]  }
  0x45   : > { %1597 = vmatmul.mubr.bf16.vlgmr.msra.gmra.mxu1 %v370_v24  ;;  %1601 = vmatpush3.bf16.msra.mxu0 %v1779_v37  ;;  %v1814_v24 = vld [vmem:[%s1971_s22 + $0x38] sm:$0xff]   ;;  %v1824_v37 = vld [vmem:[%s1971_s22 + $0x10] sm:$0xff]  }
  0x46   : > { %1621 = vmatpush3.bf16.msra.mxu1 %v1780_v38  ;;  %1602 = vmatprep.subr.bf16.mxu0 %v1870_v8  ;;  %v1089_v38 = vshll.u32 %v1464_v35, 16 }
  0x47   : > { %1622 = vmatprep.subr.bf16.mxu1 %v1870_v8  ;;  %1616 = vmatprep.mubr.msk.bf16.mxu0 %vm1871_vm0, %v1870_v8 }
  0x48   : > { %1636 = vmatprep.mubr.msk.bf16.mxu1 %vm1871_vm0, %v1870_v8 }
  0x49   : > { %1603 = vmatpush3.bf16.msra.mxu0 %v1781_v39  ;;  %v1825_v39 = vld [vmem:[%s1971_s22 + $0x48] sm:$0xff]  }
  0x4a   : > { %1623 = vmatpush3.bf16.msra.mxu1 %v1782_v40  ;;  %1604 = vmatprep.subr.bf16.mxu0 %v1870_v8  ;;  %v1826_v40 = vld [vmem:[%s1971_s22 + $0x8] sm:$0xff]  }
  0x4b   : > { %1624 = vmatprep.subr.bf16.mxu1 %v1870_v8 }
  0x4d   : > { %1605 = vmatpush3.bf16.msra.mxu0 %v1783_v41  ;;  %v1087_v41 = vshrl.u32 %v1464_v35, 16 }
  0x4e   : > { %1625 = vmatpush3.bf16.msra.mxu1 %v1784_v42  ;;  %1606 = vmatprep.subr.bf16.mxu0 %v1870_v8  ;;  %v1091_v42 = vrot.slane %v1089_v38, 1 }
  0x4f   : > { %1626 = vmatprep.subr.bf16.mxu1 %v1870_v8 }
  0x51   : > { %1607 = vmatpush3.bf16.msra.mxu0 %v1785_v43  ;;  %v1827_v43 = vld [vmem:[%s1971_s22 + $0x40] sm:$0xff]  }
  0x52   : > { %1627 = vmatpush3.bf16.msra.mxu1 %v1786_v44  ;;  %1608 = vmatprep.subr.bf16.mxu0 %v1870_v8  ;;  %v1828_v44 = vld [vmem:[%s1971_s22] sm:$0xff]  }
  0x53   : > { %1628 = vmatprep.subr.bf16.mxu1 %v1870_v8 }
  0x55   : > { %1609 = vmatpush3.bf16.msra.mxu0 %v1787_v45  ;;  %v1092_v45 = vor.u32 %v1091_v42, %v1087_v41 }
  0x56   : > { %1629 = vmatpush3.bf16.msra.mxu1 %v1788_v48  ;;  %1610 = vmatprep.subr.bf16.mxu0 %v1870_v8 }
  0x57   : > { %1630 = vmatprep.subr.bf16.mxu1 %v1870_v8 }
  0x59   : > { %1611 = vmatpush3.bf16.msra.mxu0 %v1789_v51 }
  0x5a   : > { %1631 = vmatpush3.bf16.msra.mxu1 %v1790_v52  ;;  %1612 = vmatprep.subr.bf16.mxu0 %v1870_v8 }
  0x5b   : > { %1632 = vmatprep.subr.bf16.mxu1 %v1870_v8 }
  0x5d   : > { %1613 = vmatpush3.bf16.msra.mxu0 %v1791_v54 }
  0x5e   : > { %1633 = vmatpush3.bf16.msra.mxu1 %v1792_v55  ;;  %1614 = vmatprep.subr.bf16.mxu0 %v1870_v8 }
  0x5f   : > { %1634 = vmatprep.subr.bf16.mxu1 %v1870_v8 }
  0x61   : > { %1615 = vmatpush3.bf16.msra.mxu0 %v1793_v58 }
  0x62   : > { %1635 = vmatpush3.bf16.msra.mxu1 %v1794_v59  ;;  %1640 = vmatprep.subr.bf16.mxu0 %v1870_v8 }
  0x63   : > { %1660 = vmatprep.subr.bf16.mxu1 %v1870_v8 }
  0x64   : > { %1617 = vmatmul.mubr.bf16.vlgmr.msra.gmra.mxu0 %v640_v60 }
  0x65   : > { %1637 = vmatmul.mubr.bf16.vlgmr.msra.gmra.mxu1 %v595_v46  ;;  %1641 = vmatpush3.bf16.msra.mxu0 %v1796_v61 }
  0x66   : > { %1661 = vmatpush3.bf16.msra.mxu1 %v1797_v62  ;;  %1642 = vmatprep.subr.bf16.mxu0 %v1870_v8 }
  0x67   : > { %1662 = vmatprep.subr.bf16.mxu1 %v1870_v8  ;;  %1656 = vmatprep.mubr.msk.bf16.mxu0 %vm1871_vm0, %v1870_v8 }
  0x68   : > { %1676 = vmatprep.mubr.msk.bf16.mxu1 %vm1871_vm0, %v1870_v8 }
  0x69   : > { %1643 = vmatpush3.bf16.msra.mxu0 %v1798_v63 }
  0x6a   : > { %1663 = vmatpush3.bf16.msra.mxu1 %v1799_v2  ;;  %1644 = vmatprep.subr.bf16.mxu0 %v1870_v8 }
  0x6b   : > { %1664 = vmatprep.subr.bf16.mxu1 %v1870_v8 }
  0x6d   : > { %1645 = vmatpush3.bf16.msra.mxu0 %v1800_v3 }
  0x6e   : > { %1665 = vmatpush3.bf16.msra.mxu1 %v1801_v4  ;;  %1646 = vmatprep.subr.bf16.mxu0 %v1870_v8 }
  0x6f   : > { %1666 = vmatprep.subr.bf16.mxu1 %v1870_v8 }
  0x71   : > { %1647 = vmatpush3.bf16.msra.mxu0 %v1802_v5 }
  0x72   : > { %1667 = vmatpush3.bf16.msra.mxu1 %v1803_v6  ;;  %1648 = vmatprep.subr.bf16.mxu0 %v1870_v8 }
  0x73   : > { %1668 = vmatprep.subr.bf16.mxu1 %v1870_v8 }
  0x75   : > { %1649 = vmatpush3.bf16.msra.mxu0 %v1804_v7 }
  0x76   : > { %1669 = vmatpush3.bf16.msra.mxu1 %v1805_v11  ;;  %1650 = vmatprep.subr.bf16.mxu0 %v1870_v8 }
  0x77   : > { %1670 = vmatprep.subr.bf16.mxu1 %v1870_v8 }
  0x79   : > { %1651 = vmatpush3.bf16.msra.mxu0 %v1806_v13 }
  0x7a   : > { %1671 = vmatpush3.bf16.msra.mxu1 %v1807_v14  ;;  %1652 = vmatprep.subr.bf16.mxu0 %v1870_v8 }
  0x7b   : > { %1672 = vmatprep.subr.bf16.mxu1 %v1870_v8 }
  0x7d   : > { %1653 = vmatpush3.bf16.msra.mxu0 %v1808_v16 }
  0x7e   : > { %1673 = vmatpush3.bf16.msra.mxu1 %v1809_v17  ;;  %1654 = vmatprep.subr.bf16.mxu0 %v1870_v8 }
  0x7f   : > { %1674 = vmatprep.subr.bf16.mxu1 %v1870_v8 }
  0x81   : > { %1655 = vmatpush3.bf16.msra.mxu0 %v1810_v20 }
  0x82   : > { %1675 = vmatpush3.bf16.msra.mxu1 %v1811_v21  ;;  %1680 = vmatprep.subr.bf16.mxu0 %v1870_v8 }
  0x83   : > { %1700 = vmatprep.subr.bf16.mxu1 %v1870_v8 }
  0x84   : > { %1657 = vmatmul.mubr.bf16.vlgmr.msra.gmra.mxu0 %v866_v22 }
  0x85   : > { %1677 = vmatmul.mubr.bf16.vlgmr.msra.gmra.mxu1 %v821_v9  ;;  %1681 = vmatpush3.bf16.msra.mxu0 %v1813_v23 }
  0x86   : > { %1701 = vmatpush3.bf16.msra.mxu1 %v1814_v24  ;;  %1682 = vmatprep.subr.bf16.mxu0 %v1870_v8 }
  0x87   : > { %1702 = vmatprep.subr.bf16.mxu1 %v1870_v8  ;;  %1696 = vmatprep.mubr.msk.bf16.mxu0 %vm1871_vm0, %v1870_v8 }
  0x88   : > { %1716 = vmatprep.mubr.msk.bf16.mxu1 %vm1871_vm0, %v1870_v8 }
  0x89   : > { %1683 = vmatpush3.bf16.msra.mxu0 %v1815_v25 }
  0x8a   : > { %1703 = vmatpush3.bf16.msra.mxu1 %v1816_v26  ;;  %1684 = vmatprep.subr.bf16.mxu0 %v1870_v8 }
  0x8b   : > { %1704 = vmatprep.subr.bf16.mxu1 %v1870_v8 }
  0x8d   : > { %1685 = vmatpush3.bf16.msra.mxu0 %v1817_v27 }
  0x8e   : > { %1705 = vmatpush3.bf16.msra.mxu1 %v1818_v28  ;;  %1686 = vmatprep.subr.bf16.mxu0 %v1870_v8 }
  0x8f   : > { %1706 = vmatprep.subr.bf16.mxu1 %v1870_v8 }
  0x91   : > { %1687 = vmatpush3.bf16.msra.mxu0 %v1819_v29 }
  0x92   : > { %1707 = vmatpush3.bf16.msra.mxu1 %v1820_v30  ;;  %1688 = vmatprep.subr.bf16.mxu0 %v1870_v8 }
  0x93   : > { %1708 = vmatprep.subr.bf16.mxu1 %v1870_v8 }
  0x95   : > { %1689 = vmatpush3.bf16.msra.mxu0 %v1821_v31 }
  0x96   : > { %1709 = vmatpush3.bf16.msra.mxu1 %v1822_v34  ;;  %1690 = vmatprep.subr.bf16.mxu0 %v1870_v8 }
  0x97   : > { %1710 = vmatprep.subr.bf16.mxu1 %v1870_v8 }
  0x99   : > { %1691 = vmatpush3.bf16.msra.mxu0 %v1823_v36 }
  0x9a   : > { %1711 = vmatpush3.bf16.msra.mxu1 %v1824_v37  ;;  %1692 = vmatprep.subr.bf16.mxu0 %v1870_v8 }
  0x9b   : > { %1712 = vmatprep.subr.bf16.mxu1 %v1870_v8 }
  0x9d   : > { %1693 = vmatpush3.bf16.msra.mxu0 %v1825_v39 }
  0x9e   : > { %1713 = vmatpush3.bf16.msra.mxu1 %v1826_v40  ;;  %1694 = vmatprep.subr.bf16.mxu0 %v1870_v8 }
  0x9f   : > { %1714 = vmatprep.subr.bf16.mxu1 %v1870_v8 }
  0xa1   : > { %1695 = vmatpush3.bf16.msra.mxu0 %v1827_v43 }
  0xa2   : > { %1715 = vmatpush3.bf16.msra.mxu1 %v1828_v44 }
  0xa4   : > { %1697 = vmatmul.mubr.bf16.vlgmr.msra.gmra.mxu0 %v1092_v45 }
  0xa5   : > { %1717 = vmatmul.mubr.bf16.vlgmr.msra.gmra.mxu1 %v1047_v32 }
 0x104   : > { %v499_v46 = vpop.f32.mrf.mxu0 }
 0x105   : > { %v587_v47 = vpop.f32.mrf.mxu1 }
 0x106   : > { %v588_v48 = vadd.f32 %v587_v47, %v499_v46  ;;  %v1578_v49 = vpop.f32.mrf.mxu0 }
 0x107   : > { %v1598_v50 = vpop.f32.mrf.mxu1 }
 0x108   : > { %593 = vst [vmem:[%s2121_s26] sm:$0xff] %v588_v48  ;;  %v502_v8 = vpop.f32.mrf.mxu0 }
 0x109   : > { %v590_v51 = vpop.f32.mrf.mxu1 }
 0x10a   : > { %v1579_v52 = vpop.f32.mrf.mxu0 }
 0x10b   : > { %v1599_v53 = vpop.f32.mrf.mxu1 }
 0x124   : > { %v724_v54 = vpop.f32.mrf.mxu0 }
 0x125   : > { %v812_v55 = vpop.f32.mrf.mxu1 }
 0x126   : > { %v813_v56 = vadd.f32 %v812_v55, %v724_v54  ;;  %v1618_v57 = vpop.f32.mrf.mxu0 }
 0x127   : > { %v1638_v58 = vpop.f32.mrf.mxu1 }
 0x128   : > { %1445 = vst [vmem:[%s2121_s26 + $0x8] sm:$0xff] %v813_v56  ;;  %v727_v59 = vpop.f32.mrf.mxu0 }
 0x129   : > { %v815_v60 = vpop.f32.mrf.mxu1 }
 0x12a   : > { %v1619_v61 = vpop.f32.mrf.mxu0 }
 0x12b   : > { %v1639_v62 = vpop.f32.mrf.mxu1 }
 0x144   : > { %v950_v63 = vpop.f32.mrf.mxu0 }
 0x145   : > { %v1038_v0 = vpop.f32.mrf.mxu1 }
 0x146   : > { %v1039_v1 = vadd.f32 %v1038_v0, %v950_v63  ;;  %v1658_v2 = vpop.f32.mrf.mxu0 }
 0x147   : > { %v1678_v3 = vpop.f32.mrf.mxu1 }
 0x148   : > { %1463 = vst [vmem:[%s2121_s26 + $0x10] sm:$0xff] %v1039_v1  ;;  %v953_v4 = vpop.f32.mrf.mxu0 }
 0x149   : > { %v1041_v5 = vpop.f32.mrf.mxu1 }
 0x14a   : > { %v1659_v6 = vpop.f32.mrf.mxu0 }
 0x14b   : > { %v1679_v7 = vpop.f32.mrf.mxu1 }
 0x164   : > { %v1176_v9 = vpop.f32.mrf.mxu0 }
 0x165   : > { %v1264_v10 = vpop.f32.mrf.mxu1 }
 0x166   : > { %v1265_v11 = vadd.f32 %v1264_v10, %v1176_v9  ;;  %v1698_v12 = vpop.f32.mrf.mxu0 }
 0x167   : > { %v1718_v13 = vpop.f32.mrf.mxu1 }
 0x168   : > { %1481 = vst [vmem:[%s2121_s26 + $0x18] sm:$0xff] %v1265_v11  ;;  %v1179_v14 = vpop.f32.mrf.mxu0 }
 0x169   : > { %v1267_v15 = vpop.f32.mrf.mxu1 }
 0x16a   : > { %v1699_v16 = vpop.f32.mrf.mxu0 }
 0x16b   : > { %v1719_v17 = vpop.f32.mrf.mxu1 }
 0x16c PF: > { %s13_s16 = sadd.s32 1, %s1868_s16   ;;  %s2147_s12 = smov %s1856_s13 }
 0x16d   : > { %p10_p10 = scmp.ge.s32.totalorder %s13_s16, 4   ;;  %s2148_s13 = smov %s1931_s21 }
 0x16e   : > { %s2149_s14 = smov %s1864_s15  ;;  %s2150_s15 = smov %s2152_s17 }
 0x16f   :  { %12 = sbr.rel (!%p10_p10) target bundleno = 3 (0x3), region = 166 }

</bundles_post_ra>
